<compile_context>
chip_gen: v5e
topology: v5e:2x2
jax: 0.10.0
libtpu: 0.0.40
codegen_flags: <defaults>
</compile_context>

<pallas_src>
import jax
import jax.numpy as jnp
from jax.experimental import pallas as pl
from jax.experimental.pallas import tpu as pltpu


def se_kernel(x_ref, w1t_ref, w2_ref, o_ref):
    """x_ref: (Bt, C, L); w1t_ref: (C, H) = W1.T; w2_ref: (C, H) = W2; o_ref: (Bt, C, L)."""
    x = x_ref[...]                               # native dtype; no f32 copy of the big tile
    inv_l = 1.0 / x_ref.shape[-1]                # multiply by 1/L, do not divide

    # --- squeeze: per-(b, c) mean over L, f32 accumulation --------------------------
    m = jnp.sum(x, axis=-1, keepdims=True, dtype=jnp.float32) * inv_l        # (Bt, C, 1)

    # --- excite on the VPU (broadcast-multiply + reduce; H = C/r is tiny) -----------
    w1t = w1t_ref[...].astype(jnp.float32)[None]        # (1, C, H): w1t[0,c,j] = W1[j,c]
    h = jnp.maximum(jnp.sum(m * w1t, axis=1, keepdims=True), 0.0)            # (Bt, 1, H)
    w2 = w2_ref[...].astype(jnp.float32)[None]          # (1, C, H): w2[0,c,j]  = W2[c,j]
    g = jax.nn.sigmoid(jnp.sum(h * w2, axis=2, keepdims=True))               # (Bt, C, 1)

    # --- scale: cast the tiny gate (not the tile) and broadcast over the L lanes ----
    o_ref[...] = (x * g.astype(x.dtype)).astype(o_ref.dtype)


def _pick_batch_tile(b, c, l, itemsize, budget_bytes):
    """Largest divisor of b whose double-buffered in+out blocks (+ lane-padded f32
    excite intermediates) fit the VMEM budget, keeping >= 2 grid steps when possible
    so the batch grid can be split across v7x's two TensorCores."""
    per_row = 4 * c * l * itemsize + 2 * c * 128 * 4
    cap = max(1, budget_bytes // per_row)
    if b >= 2:
        cap = min(cap, b // 2)
    bt = 1
    for d in range(1, min(b, cap) + 1):
        if b % d == 0:
            bt = d
    return bt


def se_layer(x, w1, w2, *, batch_tile=None, vmem_budget_bytes=40 << 20):
    """Squeeze-and-excitation.  x: (B, C, L); w1: (H, C), w2: (C, H) in PyTorch
    nn.Linear weight layout (out_features, in_features), with H = C // reduction."""
    B, C, L = x.shape
    H = w1.shape[0]
    assert w1.shape == (H, C) and w2.shape == (C, H) and H >= 1

    itemsize = jnp.dtype(x.dtype).itemsize
    Bt = batch_tile if batch_tile is not None else _pick_batch_tile(
        B, C, L, itemsize, vmem_budget_bytes)
    assert B % Bt == 0, (B, Bt)
    grid = (B // Bt,)

    # Present both weights as (C, H) so the kernel needs no in-kernel transposes.
    w1t = jnp.transpose(w1)                      # (C, H)

    block_bytes = Bt * C * L * itemsize
    vmem_need = (4 * block_bytes                             # double-buffered in + out blocks
                 + 2 * Bt * C * 128 * 4                      # lane-padded f32 excite intermediates
                 + 4 * C * H * jnp.dtype(w1.dtype).itemsize  # weight blocks
                 + (2 << 20))                                # headroom
    vmem_limit = int(max(vmem_need, 32 << 20))

    return pl.pallas_call(
        se_kernel,
        out_shape=jax.ShapeDtypeStruct((B, C, L), x.dtype),
        grid_spec=pltpu.PrefetchScalarGridSpec(
            num_scalar_prefetch=0,
            grid=grid,
            in_specs=[
                pl.BlockSpec((Bt, C, L), lambda b: (b, 0, 0)),
                pl.BlockSpec((C, H), lambda b: (0, 0)),
                pl.BlockSpec((C, H), lambda b: (0, 0)),
            ],
            out_specs=pl.BlockSpec((Bt, C, L), lambda b: (b, 0, 0)),
        ),
        compiler_params=pltpu.CompilerParams(
            dimension_semantics=("parallel",),
            vmem_limit_bytes=vmem_limit),
    )(x, w1t, w2)


def se_layer_ref(x, w1, w2):
    hi = jax.lax.Precision.HIGHEST
    m = jnp.mean(x.astype(jnp.float32), axis=-1)                                   # (B, C)
    h = jnp.maximum(jnp.dot(m, w1.astype(jnp.float32).T, precision=hi), 0.0)       # (B, H)
    g = jax.nn.sigmoid(jnp.dot(h, w2.astype(jnp.float32).T, precision=hi))         # (B, C)
    return (x * g.astype(x.dtype)[:, :, None]).astype(x.dtype)


def _run_case(key, B, C, L, reduction, dtype, atol, rtol, name):
    H = max(1, C // reduction)
    kx, k1, k2 = jax.random.split(key, 3)
    x = jax.random.normal(kx, (B, C, L), dtype=jnp.float32).astype(dtype)
    # PyTorch nn.Linear weight shapes: w1 (H, C), w2 (C, H); deterministic synthetic values.
    w1 = jax.random.normal(k1, (H, C), dtype=jnp.float32) * (1.0 / jnp.sqrt(C))
    w2 = jax.random.normal(k2, (C, H), dtype=jnp.float32) * (1.0 / jnp.sqrt(H))

    out = jax.block_until_ready(se_layer(x, w1, w2))
    ref = se_layer_ref(x, w1, w2)
    assert out.shape == (B, C, L) and out.dtype == x.dtype, name
    err = float(jnp.max(jnp.abs(out.astype(jnp.float32) - ref.astype(jnp.float32))))
    assert jnp.allclose(out.astype(jnp.float32), ref.astype(jnp.float32),
                        atol=atol, rtol=rtol), (name, err)


if __name__ == "__main__":
    key = jax.random.PRNGKey(0)
    k0, k1, k2 = jax.random.split(key, 3)
    # Small, lane-dense main case (L a multiple of 128; Bt=4 -> 2 grid steps).
    _run_case(k0, B=8, C=32, L=128, reduction=16, dtype=jnp.float32,
              atol=1e-5, rtol=1e-5, name="f32_lane_dense")
    # Ragged L (not a multiple of 128) and wider C: exercises masked tail stores.
    _run_case(k1, B=4, C=128, L=200, reduction=16, dtype=jnp.float32,
              atol=1e-5, rtol=1e-5, name="f32_ragged_L")
    # bf16 I/O (gate math stays f32) — the HBM-bound configuration for v5e/v6e.
    _run_case(k2, B=8, C=32, L=128, reduction=16, dtype=jnp.bfloat16,
              atol=2e-2, rtol=2e-2, name="bf16_io")
    print("KERNEL_OK")
</pallas_src>

<mosaic_0001>
module attributes {stable_mosaic.version = 11 : i64} {
  func.func @se_kernel(%arg0: i32, %arg1: memref<4x32x128xf32, #tpu.memory_space<vmem>>, %arg2: memref<32x2xf32, #tpu.memory_space<vmem>>, %arg3: memref<32x2xf32, #tpu.memory_space<vmem>>, %arg4: memref<4x32x128xf32, #tpu.memory_space<vmem>>) attributes {dimension_semantics = [#tpu.dimension_semantics<parallel>], iteration_bounds = array<i64: 2>, scalar_prefetch = 0 : i64, scratch_operands = 0 : i64, tpu.core_type = #tpu.core_type<tc>, window_params = [{transform_indices = @transform_0, window_bounds = array<i64: 4, 32, 128>}, {pipeline_mode = #tpu.pipeline_mode<synchronous>, transform_indices = @transform_1, window_bounds = array<i64: 32, 2>}, {pipeline_mode = #tpu.pipeline_mode<synchronous>, transform_indices = @transform_2, window_bounds = array<i64: 32, 2>}, {transform_indices = @transform_3, window_bounds = array<i64: 4, 32, 128>}]} {
    %c0 = arith.constant 0 : index
    %c0_0 = arith.constant 0 : index
    %c0_1 = arith.constant 0 : index
    %0 = vector.load %arg1[%c0, %c0_0, %c0_1] : memref<4x32x128xf32, #tpu.memory_space<vmem>>, vector<4x32x128xf32>
    %cst = arith.constant dense<0.000000e+00> : vector<4x32xf32>
    %1 = vector.multi_reduction <add>, %0, %cst [2] : vector<4x32x128xf32> to vector<4x32xf32>
    %2 = vector.shape_cast %1 : vector<4x32xf32> to vector<4x32x1xf32>
    %cst_2 = arith.constant 7.812500e-03 : f32
    %3 = vector.broadcast %cst_2 : f32 to vector<4x32x1xf32>
    %4 = arith.mulf %2, %3 : vector<4x32x1xf32>
    %c0_3 = arith.constant 0 : index
    %c0_4 = arith.constant 0 : index
    %5 = vector.load %arg2[%c0_3, %c0_4] : memref<32x2xf32, #tpu.memory_space<vmem>>, vector<32x2xf32>
    %6 = vector.shape_cast %5 : vector<32x2xf32> to vector<1x32x2xf32>
    %7 = vector.broadcast %4 : vector<4x32x1xf32> to vector<4x32x2xf32>
    %8 = vector.broadcast %6 : vector<1x32x2xf32> to vector<4x32x2xf32>
    %9 = arith.mulf %7, %8 : vector<4x32x2xf32>
    %cst_5 = arith.constant dense<0.000000e+00> : vector<4x2xf32>
    %10 = vector.multi_reduction <add>, %9, %cst_5 [1] : vector<4x32x2xf32> to vector<4x2xf32>
    %11 = vector.shape_cast %10 : vector<4x2xf32> to vector<4x1x2xf32>
    %cst_6 = arith.constant 0.000000e+00 : f32
    %12 = vector.broadcast %cst_6 : f32 to vector<4x1x2xf32>
    %13 = arith.maximumf %11, %12 : vector<4x1x2xf32>
    %c0_7 = arith.constant 0 : index
    %c0_8 = arith.constant 0 : index
    %14 = vector.load %arg3[%c0_7, %c0_8] : memref<32x2xf32, #tpu.memory_space<vmem>>, vector<32x2xf32>
    %15 = vector.shape_cast %14 : vector<32x2xf32> to vector<1x32x2xf32>
    %16 = vector.broadcast %13 : vector<4x1x2xf32> to vector<4x32x2xf32>
    %17 = vector.broadcast %15 : vector<1x32x2xf32> to vector<4x32x2xf32>
    %18 = arith.mulf %16, %17 : vector<4x32x2xf32>
    %cst_9 = arith.constant dense<0.000000e+00> : vector<4x32xf32>
    %19 = vector.multi_reduction <add>, %18, %cst_9 [2] : vector<4x32x2xf32> to vector<4x32xf32>
    %20 = vector.shape_cast %19 : vector<4x32xf32> to vector<4x32x1xf32>
    %21 = arith.negf %20 : vector<4x32x1xf32>
    %22 = math.exp %21 : vector<4x32x1xf32>
    %cst_10 = arith.constant 1.000000e+00 : f32
    %23 = vector.broadcast %cst_10 : f32 to vector<4x32x1xf32>
    %24 = arith.addf %23, %22 : vector<4x32x1xf32>
    %25 = arith.divf %23, %24 : vector<4x32x1xf32>
    %26 = vector.broadcast %25 : vector<4x32x1xf32> to vector<4x32x128xf32>
    %27 = arith.mulf %0, %26 : vector<4x32x128xf32>
    %c0_11 = arith.constant 0 : index
    %c0_12 = arith.constant 0 : index
    %c0_13 = arith.constant 0 : index
    %28 = vector.load %arg4[%c0_11, %c0_12, %c0_13] : memref<4x32x128xf32, #tpu.memory_space<vmem>>, vector<4x32x128xf32>
    tpu.vector_store %arg4[%c0_11, %c0_12, %c0_13], %27 {strides = array<i32>} : memref<4x32x128xf32, #tpu.memory_space<vmem>>, vector<4x32x128xf32>,
    return
  }
  func.func @transform_0(%arg0: i32) -> (i32, i32, i32) {
    %c0_i32 = arith.constant 0 : i32
    %c0_i32_0 = arith.constant 0 : i32
    %c0_i32_1 = arith.constant 0 : i32
    return %arg0, %c0_i32, %c0_i32_0 : i32, i32, i32
  }
  func.func @transform_1(%arg0: i32) -> (i32, i32) {
    %c0_i32 = arith.constant 0 : i32
    %c0_i32_0 = arith.constant 0 : i32
    %c0_i32_1 = arith.constant 0 : i32
    return %c0_i32, %c0_i32_0 : i32, i32
  }
  func.func @transform_2(%arg0: i32) -> (i32, i32) {
    %c0_i32 = arith.constant 0 : i32
    %c0_i32_0 = arith.constant 0 : i32
    %c0_i32_1 = arith.constant 0 : i32
    return %c0_i32, %c0_i32_0 : i32, i32
  }
  func.func @transform_3(%arg0: i32) -> (i32, i32, i32) {
    %c0_i32 = arith.constant 0 : i32
    %c0_i32_0 = arith.constant 0 : i32
    %c0_i32_1 = arith.constant 0 : i32
    return %arg0, %c0_i32, %c0_i32_0 : i32, i32, i32
  }
}

</mosaic_0001>

<bundles_post_ra>
// kernel: tpu_custom_call.1
= control target key start
LH: loop header
LB: loop body
LE: loop exit
PB: predicated region body
PF: predicated region fallthrough
CT: control target
= control target key end

     0   :  { %8 = vsyncpa [#allocation3], 0  ;;  %s1588_s0 = inlined_call_operand.hbm [shape: f32[8,32,128], index: 0, kind: input, shape index: {}]   ;;  %s1589_s1 = inlined_call_operand.vmem [shape: f32[32,2], index: 1, kind: input, shape index: {}]   ;;  %s1590_s2 = inlined_call_operand.vmem [shape: f32[32,2], index: 2, kind: input, shape index: {}]   ;;  %s1591_s3 = inlined_call_operand.hbm [shape: f32[8,32,128], index: 3, kind: output, shape index: {}]  }
   0x1   :  { %10 = vsyncpa [#allocation3 + $0x1], 0 }
   0x2   :  { %11 = vsyncpa [#allocation4], 0 }
   0x3   :  { %13 = vsyncpa [#allocation4 + $0x1], 0  ;;  %s1103_s12 = smov 0   ;;  %s1105_s13 = smov 0  }
   0x4   :  { %s1107_s14 = smov 0   ;;  %s1109_s15 = smov 0  }
   0x5 LB: > { %s1124_s16 = sadd.s32 4294967295, %s1077_s15   ;;  %s829_s17 = sadd.s32 4294967294, %s1077_s15   ;;  %s1077_s15 = sphi %s1109_s15, %s1623_s15   ;;  %s1073_s14 = sphi %s1107_s14, %s1622_s14   ;;  %s1069_s13 = sphi %s1105_s13, %s1621_s13   ;;  %s1065_s12 = sphi %s1103_s12, %s1620_s12  }
   0x6   : > { %s1128_s18 = sadd.s32 1, %s1077_s15   ;;  %s26_s19 = sadd.s32 1, %s1073_s14 }
   0x7   : > { %s23_s20 = ssub.s32 %s1077_s15, %s1128_s18  ;;  %p33_p0 = scmp.ne.s32.totalorder %s1073_s14, %s1069_s13 }
   0x8   : > { %p24_p1 = scmp.eq.s32.totalorder %s23_s20, 0  ;;  %p34_p2 = scmp.eq.s32.totalorder %s1077_s15, 0 }
   0x9   : > { %p39_p3 = scmp.ne.s32.totalorder %s1069_s13, %s1065_s12  ;;  %p40_p4 = scmp.eq.s32.totalorder %s1124_s16, 0 }
   0xa   : > { %s1140_s21 = scalar_select %p24_p1, %s1073_s14, %s26_s19  }
   0xb   : > { %p1142_p5 = por %p34_p2, %p33_p0  ;;  %p1146_p6 = por %p40_p4, %p39_p3 }
   0xc   : > { %p105_p7 = scmp.eq.s32.totalorder %s1124_s16, 1  ;;  %p111_p8 = scmp.eq.s32.totalorder %s829_s17, 1 }
   0xd   : > { %p877_p10 = scmp.lt.s32.totalorder %s1077_s15, 2  ;;  %s137_s26 = sand.u32 1, %s1073_s14  }
   0xe   : > { %p1153_p11 = por %p105_p7, %p33_p0  ;;  %p1157_p12 = por %p111_p8, %p39_p3 }
   0xf   : > { %s862_s27 = sshll.u32 %s1077_s15, 7  ;;  %s832_s28 = sshll.u32 %s137_s26, 7 }
  0x10   : > { %s147_s4 = scalar_lea.hbm %s1588_s0, %s862_s27  ;;  %s141_s6 = scalar_lea.vmem [#allocation2], %s832_s28 }
  0x11   : > { %s148_s5 = sshll.u32 %s147_s4, 4  ;;  %s150_s7 = sshll.u32 %s141_s6, 4  ;;  %s149_s5 = int_to_ptr.hbm [resolvable:$true] %s148_s5  ;;  %s151_s7 = int_to_ptr.vmem [resolvable:$true] %s150_s7 }
  0x12   : > { %p1168_p13 = pnand %p877_p10, %p1142_p5  ;;  %p836_p0 = scmp.ge.s32.totalorder %s1077_s15, 1 }
  0x13   : > { %p158_p1 = scmp.lt.s32.totalorder %s1077_s15, 3  ;;  %s138_s9 = scalar_lea.sflag [#allocation3], %s137_s26 }
  0x14   : > { %s981_s10 = sshra.s32 %s149_s5, 4  ;;  %p985_p3 = pneg %p1168_p13  ;;  %s982_s10 = int_to_ptr.hbm [resolvable:$true] %s981_s10 }
  0x15   : > { %s983_s11 = scalar_lea.hbm %s982_s10, 128  ;;  %s988_s20 = scalar_lea.hbm %s1588_s0, 256 }
  0x16   : > { %p984_p2 = scmp.ne.s32.totalorder %s982_s10, %s983_s11  ;;  %p989_p5 = scmp.lt.s32.totalorder %s982_s10, %s1588_s0 }
  0x17   : > { %p990_p8 = scmp.lt.s32.totalorder %s988_s20, %s983_s11 }
  0x18   : > { %p986_p4 = pnand %p985_p3, %p984_p2 }
  0x19   : > { %p991_p10 = por %p990_p8, %p989_p5 }
  0x1a   : > { %p987_p7 = pneg %p986_p4 }
  0x1c   : > { %p992_p9 = pnand %p991_p10, %p987_p7 }
  0x1e   : > { %995 = shalt.err (!%p992_p9)
}
  0x1f   : > { %s1079_s26 = smov 128   ;;  %s1080_s28 = smov 8  }
  0x20   : > { %872 = dma.hbm_to_vmem [thread:$0]  (!%p1168_p13), %s149_s5, 2048, %s151_s7, %s138_s9, %s1079_s26, %s1079_s26, %s1080_s28  }
  0x21   : > { %p159_p2 = pnand %p836_p0, %p158_p1 }
  0x22   : > { %s1189_s29 = sand.u32 (!%p159_p2), 1, %s1069_s13  }
  0x23   : > { %162 = sbr.rel (%p159_p2) target bundleno = 420 (0x1a4), region = 32  ;;  %s837_s30 = sshll.u32 (!%p159_p2), %s1189_s29, 7 }
  0x24   : > { %s165_s4 = scalar_lea.sflag (!%p159_p2), [#allocation3], %s1189_s29  ;;  %s1195_s6 = scalar_lea.vmem (!%p159_p2), [#allocation2], %s837_s30 }
  0x28   : > { %1056 = dma.done.wait (%p1146_p6), %s165_s4, 2048  }
  0x29   : > { %1058 = vsyncadd (%p1146_p6), %s165_s4, 4294965248  ;;  %v1202_v0 = vld [vmem:[%s1195_s6 + $0x40] sm:$0xff]  ;;  %v1214_v3 = vld [vmem:[%s1195_s6 + $0x48] sm:$0xff]  ;;  %vm278_vm0 = vcmask 15360   ;;  %s1379_s5 = scalar_lea.vmem [#allocation5], %s837_s30  ;;  %s864_s30 = sshll.u32 %s1124_s16, 7 }
  0x2a   : > { %v1205_v1 = vld [vmem:[%s1195_s6 + $0x20] sm:$0xff]  ;;  %226 = vadd.xlane.f32.xlu2 %v1202_v0  ;;  %v1217_v4 = vld [vmem:[%s1195_s6 + $0x28] sm:$0xff]  ;;  %v1229_v7 = vld [vmem:[%s1195_s6 + $0x10] sm:$0xff]  ;;  %s752_s16 = scalar_lea.hbm %s1591_s3, %s864_s30  ;;  %s753_s9 = sshll.u32 %s1379_s5, 4  ;;  %s754_s9 = int_to_ptr.vmem [resolvable:$true] %s753_s9 }
  0x2b   : > { %v1208_v2 = vld [vmem:[%s1195_s6] sm:$0xff]  ;;  %218 = vadd.xlane.f32.xlu1 %v1205_v1  ;;  %v1220_v5 = vld [vmem:[%s1195_s6 + $0x8] sm:$0xff]  ;;  %v1238_v9 = vld [vmem:[%s1195_s6 + $0x50] sm:$0xff]  ;;  %s755_s10 = sshll.u32 %s752_s16, 4  ;;  %s740_s11 = scalar_lea.sflag [#allocation4], %s1189_s29  ;;  %s756_s10 = int_to_ptr.hbm [resolvable:$true] %s755_s10 }
  0x2c   : > { %210 = vadd.xlane.f32.xlu0 %v1208_v2  ;;  %v1226_v6 = vld [vmem:[%s1195_s6 + $0x68] sm:$0xff]  ;;  %v1232_v8 = vld [vmem:[%s1195_s6 + $0x60] sm:$0xff]  ;;  %v208_v10 = vld [vmem:[%s1195_s6 + $0x70] sm:$0xff]  ;;  %s1025_s17 = sshra.s32 %s756_s10, 4  ;;  %s1031_s27 = scalar_lea.hbm %s1591_s3, 256  ;;  %s1026_s17 = int_to_ptr.hbm [resolvable:$true] %s1025_s17 }
  0x2d   : > { %v1242_v11 = vld [vmem:[%s1195_s6 + $0x30] sm:$0xff]  ;;  %v1247_v12 = vld [vmem:[%s1195_s6 + $0x38] sm:$0xff]  ;;  %v258_v33 = vld [vmem:[%s1589_s1] sm:$0xff]  ;;  %s1027_s19 = scalar_lea.hbm %s1026_s17, 128  ;;  %p1032_p0 = scmp.lt.s32.totalorder %s1026_s17, %s1591_s3 }
  0x2e   : > { %v1250_v13 = vld [vmem:[%s1195_s6 + $0x58] sm:$0xff]  ;;  %v259_v34 = vld [vmem:[%s1589_s1 + $0x8] sm:$0xff]  ;;  %v260_v43 = vld [vmem:[%s1589_s1 + $0x10] sm:$0xff]  ;;  %p1028_p6 = scmp.ne.s32.totalorder %s1026_s17, %s1027_s19  ;;  %p1033_p1 = scmp.lt.s32.totalorder %s1031_s27, %s1027_s19 }
  0x2f   : > { %v1253_v14 = vld [vmem:[%s1195_s6 + $0x18] sm:$0xff] }
  0x30   : > { %v209_v15 = vld [vmem:[%s1195_s6 + $0x78] sm:$0xff]  ;;  %p1029_p9 = pnand %p1028_p6, %p1153_p11  ;;  %p1034_p3 = por %p1033_p1, %p1032_p0 }
  0x31   : > { %v261_v55 = vld [vmem:[%s1589_s1 + $0x18] sm:$0xff] }
  0x32   : > { %228 = vadd.xlane.f32.xlu2 %v1214_v3  ;;  %p1030_p13 = pneg %p1029_p9 }
  0x33   : > { %220 = vadd.xlane.f32.xlu1 %v1217_v4 }
  0x34   : > { %212 = vadd.xlane.f32.xlu0 %v1220_v5  ;;  %p1035_p4 = pnand %p1034_p3, %p1030_p13 }
  0x3a   : > { %214 = vadd.xlane.f32.xlu2 %v1229_v7 }
  0x3b   : > { %236 = vadd.xlane.f32.xlu1 %v1226_v6 }
  0x3c   : > { %234 = vadd.xlane.f32.xlu0 %v1232_v8 }
  0x42   : > { %238 = vadd.xlane.f32.xlu2 %v208_v10 }
  0x43   : > { %230 = vadd.xlane.f32.xlu1 %v1238_v9 }
  0x44   : > { %222 = vadd.xlane.f32.xlu0 %v1242_v11 }
  0x4a   : > { %232 = vadd.xlane.f32.xlu2 %v1250_v13 }
  0x4b   : > { %224 = vadd.xlane.f32.xlu1 %v1247_v12 }
  0x4c   : > { %216 = vadd.xlane.f32.xlu0 %v1253_v14 }
  0x54   : > { %240 = vadd.xlane.f32.xlu0 %v209_v15 }
  0x9d   : > { %v227_v16 = vpop.xlane.xlu2 %226 }
  0x9e   : > { %v219_v17 = vpop.xlane.xlu1 %218  ;;  %v250_v25 = vmul.f32 0.0078125, %v227_v16 }
  0x9f   : > { %v211_v18 = vpop.xlane.xlu0 %210  ;;  %v246_v26 = vmul.f32 0.0078125, %v219_v17 }
  0xa0   : > { %v242_v29 = vmul.f32 0.0078125, %v211_v18  ;;  %v270_v39 = vmul.f32 %v258_v33, %v250_v25 }
  0xa1   : > { %v266_v40 = vmul.f32 %v258_v33, %v246_v26 }
  0xa2   : > { %v262_v44 = vmul.f32 %v258_v33, %v242_v29  ;;  %v305_v49 = vsel %vm278_vm0, %v270_v39, 0.0 }
  0xa3   : > { %v292_v50 = vsel %vm278_vm0, %v266_v40, 0.0 }
  0xa4   : > { %v279_v53 = vsel %vm278_vm0, %v262_v44, 0.0 }
  0xa5   : > { %v229_v19 = vpop.xlane.xlu2 %228 }
  0xa6   : > { %v221_v20 = vpop.xlane.xlu1 %220  ;;  %v251_v27 = vmul.f32 0.0078125, %v229_v19 }
  0xa7   : > { %v213_v21 = vpop.xlane.xlu0 %212  ;;  %v247_v28 = vmul.f32 0.0078125, %v221_v20 }
  0xa8   : > { %v243_v30 = vmul.f32 0.0078125, %v213_v21  ;;  %v271_v41 = vmul.f32 %v259_v34, %v251_v27 }
  0xa9   : > { %v267_v42 = vmul.f32 %v259_v34, %v247_v28 }
  0xaa   : > { %v263_v45 = vmul.f32 %v259_v34, %v243_v30  ;;  %v306_v51 = vsel %vm278_vm0, %v271_v41, 0.0 }
  0xab   : > { %v293_v52 = vsel %vm278_vm0, %v267_v42, 0.0  ;;  %v307_v63 = vadd.f32 %v306_v51, %v305_v49 }
  0xac   : > { %v280_v54 = vsel %vm278_vm0, %v263_v45, 0.0  ;;  %v294_v10 = vadd.f32 %v293_v52, %v292_v50 }
  0xad   : > { %v215_v23 = vpop.xlane.xlu2 %214  ;;  %v281_v17 = vadd.f32 %v280_v54, %v279_v53 }
  0xae   : > { %v237_v22 = vpop.xlane.xlu1 %236  ;;  %v244_v37 = vmul.f32 0.0078125, %v215_v23 }
  0xaf   : > { %v235_v24 = vpop.xlane.xlu0 %234  ;;  %v255_v20 = vmul.f32 0.0078125, %v237_v22 }
  0xb0   : > { %v264_v48 = vmul.f32 %v260_v43, %v244_v37  ;;  %v254_v27 = vmul.f32 0.0078125, %v235_v24 }
  0xb1   : > { %v275_v40 = vmul.f32 %v259_v34, %v255_v20 }
  0xb2   : > { %v282_v15 = vsel %vm278_vm0, %v264_v48, 0.0  ;;  %v274_v41 = vmul.f32 %v258_v33, %v254_v27  ;;  %v338_v27 = vld [vmem:[%s1590_s2 + $0x18] sm:$0xff] }
  0xb3   : > { %v283_v26 = vadd.f32 %v282_v15, %v281_v17  ;;  %v319_v49 = vsel %vm278_vm0, %v275_v40, 0.0 }
  0xb4   : > { %v318_v50 = vsel %vm278_vm0, %v274_v41, 0.0 }
  0xb5   : > { %v239_v32 = vpop.xlane.xlu2 %238  ;;  %v320_v34 = vadd.f32 %v319_v49, %v318_v50 }
  0xb6   : > { %v231_v31 = vpop.xlane.xlu1 %230 }
  0xb7   : > { %v252_v35 = vmul.f32 0.0078125, %v231_v31  ;;  %v223_v36 = vpop.xlane.xlu0 %222 }
  0xb8   : > { %v248_v38 = vmul.f32 0.0078125, %v223_v36  ;;  %v256_v36 = vmul.f32 0.0078125, %v239_v32 }
  0xb9   : > { %v272_v46 = vmul.f32 %v260_v43, %v252_v35 }
  0xba   : > { %v268_v47 = vmul.f32 %v260_v43, %v248_v38 }
  0xbb   : > { %v308_v58 = vsel %vm278_vm0, %v272_v46, 0.0  ;;  %v276_v46 = vmul.f32 %v260_v43, %v256_v36 }
  0xbc   : > { %v295_v59 = vsel %vm278_vm0, %v268_v47, 0.0  ;;  %v309_v21 = vadd.f32 %v308_v58, %v307_v63  ;;  %v335_v63 = vld [vmem:[%s1590_s2] sm:$0xff] }
  0xbd   : > { %v233_v57 = vpop.xlane.xlu2 %232  ;;  %v296_v23 = vadd.f32 %v295_v59, %v294_v10  ;;  %v321_v53 = vsel %vm278_vm0, %v276_v46, 0.0 }
  0xbe   : > { %v225_v56 = vpop.xlane.xlu1 %224  ;;  %v253_v61 = vmul.f32 0.0078125, %v233_v57  ;;  %v322_v43 = vadd.f32 %v321_v53, %v320_v34 }
  0xbf   : > { %v249_v60 = vmul.f32 0.0078125, %v225_v56  ;;  %v217_v62 = vpop.xlane.xlu0 %216 }
  0xc0   : > { %v245_v16 = vmul.f32 0.0078125, %v217_v62  ;;  %v273_v19 = vmul.f32 %v261_v55, %v253_v61  ;;  %v337_v62 = vld [vmem:[%s1590_s2 + $0x10] sm:$0xff] }
  0xc1   : > { %v269_v18 = vmul.f32 %v261_v55, %v249_v60 }
  0xc2   : > { %v265_v25 = vmul.f32 %v261_v55, %v245_v16  ;;  %v310_v29 = vsel %vm278_vm0, %v273_v19, 0.0 }
  0xc3   : > { %v297_v28 = vsel %vm278_vm0, %v269_v18, 0.0  ;;  %v311_v31 = vadd.f32 %v310_v29, %v309_v21 }
  0xc4   : > { %v298_v30 = vadd.f32 %v297_v28, %v296_v23  ;;  %v284_v35 = vsel %vm278_vm0, %v265_v25, 0.0 }
  0xc5   : > { %v285_v37 = vadd.f32 %v284_v35, %v283_v26  ;;  %v312_v39 = vrot.slane %v311_v31, 4 }
  0xc6   : > { %v299_v38 = vrot.slane %v298_v30, 4 }
  0xc7   : > { %v286_v22 = vrot.slane %v285_v37, 4  ;;  %v241_v42 = vpop.xlane.xlu0 %240  ;;  %v313_v48 = vadd.f32 %v312_v39, %v311_v31 }
  0xc8   : > { %v300_v44 = vadd.f32 %v299_v38, %v298_v30  ;;  %v257_v45 = vmul.f32 0.0078125, %v241_v42 }
  0xc9   : > { %v287_v24 = vadd.f32 %v286_v22, %v285_v37  ;;  %v314_v33 = vrot.slane %v313_v48, 2 }
  0xca   : > { %v301_v47 = vrot.slane %v300_v44, 2  ;;  %v277_v52 = vmul.f32 %v261_v55, %v257_v45  ;;  %v336_v55 = vld [vmem:[%s1590_s2 + $0x8] sm:$0xff] }
  0xcb   : > { %v288_v51 = vrot.slane %v287_v24, 2  ;;  %v315_v60 = vadd.f32 %v314_v33, %v313_v48 }
  0xcc   : > { %v302_v32 = vadd.f32 %v301_v47, %v300_v44  ;;  %v323_v58 = vsel %vm278_vm0, %v277_v52, 0.0 }
  0xcd   : > { %v289_v54 = vadd.f32 %v288_v51, %v287_v24  ;;  %v324_v61 = vadd.f32 %v323_v58, %v322_v43  ;;  %v316_v19 = vrot.slane %v315_v60, 1 }
  0xce   : > { %v303_v56 = vrot.slane %v302_v32, 1 }
  0xcf   : > { %v290_v57 = vrot.slane %v289_v54, 1  ;;  %v325_v20 = vrot.slane %v324_v61, 4  ;;  %v317_v31 = vadd.f32 %v316_v19, %v315_v60 }
  0xd0   : > { %v304_v15 = vadd.f32 %v303_v56, %v302_v32 }
  0xd1   : > { %v291_v59 = vadd.f32 %v290_v57, %v289_v54  ;;  %v326_v28 = vadd.f32 %v325_v20, %v324_v61  ;;  %v333_v39 = vmax.f32 %v317_v31, 0.0 }
  0xd2   : > { %v332_v26 = vmax.f32 %v304_v15, 0.0 }
  0xd3   : > { %v331_v10 = vmax.f32 %v291_v59, 0.0  ;;  %v327_v36 = vrot.slane %v326_v28, 2  ;;  %v347_v22 = vmul.f32 %v335_v63, %v333_v39  ;;  %v350_v48 = vmul.f32 %v338_v27, %v333_v39 }
  0xd4   : > { %v344_v29 = vmul.f32 %v336_v55, %v332_v26  ;;  %v343_v30 = vmul.f32 %v335_v63, %v332_v26  ;;  %v346_v42 = vmul.f32 %v338_v27, %v332_v26  ;;  %v345_v44 = vmul.f32 %v337_v62, %v332_v26 }
  0xd5   : > { %v341_v16 = vmul.f32 %v337_v62, %v331_v10  ;;  %v340_v17 = vmul.f32 %v336_v55, %v331_v10  ;;  %v339_v18 = vmul.f32 %v335_v63, %v331_v10  ;;  %v342_v35 = vmul.f32 %v338_v27, %v331_v10 }
  0xd6   : > { %v370_v37 = vsel %vm278_vm0, %v344_v29, 0.0  ;;  %v367_v38 = vsel %vm278_vm0, %v343_v30, 0.0  ;;  %v328_v41 = vadd.f32 %v327_v36, %v326_v28  ;;  %v379_v46 = vsel %vm278_vm0, %v347_v22, 0.0 }
  0xd7   : > { %v361_v21 = vsel %vm278_vm0, %v341_v16, 0.0  ;;  %v358_v23 = vsel %vm278_vm0, %v340_v17, 0.0  ;;  %v355_v25 = vsel %vm278_vm0, %v339_v18, 0.0  ;;  %v364_v40 = vsel %vm278_vm0, %v342_v35, 0.0 }
  0xd8   : > { %362 = vadd.xlane.f32.xlu0 %v361_v21  ;;  %359 = vadd.xlane.f32.xlu2 %v358_v23  ;;  %v329_v45 = vrot.slane %v328_v41, 1  ;;  %v376_v24 = vsel %vm278_vm0, %v346_v42, 0.0  ;;  %v373_v47 = vsel %vm278_vm0, %v345_v44, 0.0  ;;  %v349_v49 = vmul.f32 %v337_v62, %v333_v39 }
  0xd9   : > { %356 = vadd.xlane.f32.xlu1 %v355_v25  ;;  %v348_v51 = vmul.f32 %v336_v55, %v333_v39  ;;  %v388_v52 = vsel %vm278_vm0, %v350_v48, 0.0 }
  0xda   : > { %v330_v50 = vadd.f32 %v329_v45, %v328_v41  ;;  %v385_v32 = vsel %vm278_vm0, %v349_v49, 0.0 }
  0xdb   : > { %v382_v54 = vsel %vm278_vm0, %v348_v51, 0.0 }
  0xdc   : > { %v334_v53 = vmax.f32 %v330_v50, 0.0 }
  0xde   : > { %v353_v34 = vmul.f32 %v337_v62, %v334_v53  ;;  %v352_v33 = vmul.f32 %v336_v55, %v334_v53  ;;  %v351_v56 = vmul.f32 %v335_v63, %v334_v53  ;;  %v354_v59 = vmul.f32 %v338_v27, %v334_v53 }
  0xe0   : > { %371 = vadd.xlane.f32.xlu0 %v370_v37  ;;  %368 = vadd.xlane.f32.xlu2 %v367_v38  ;;  %v397_v57 = vsel %vm278_vm0, %v353_v34, 0.0  ;;  %v394_v58 = vsel %vm278_vm0, %v352_v33, 0.0  ;;  %v391_v43 = vsel %vm278_vm0, %v351_v56, 0.0  ;;  %v400_v60 = vsel %vm278_vm0, %v354_v59, 0.0 }
  0xe1   : > { %365 = vadd.xlane.f32.xlu1 %v364_v40 }
  0xe8   : > { %380 = vadd.xlane.f32.xlu0 %v379_v46  ;;  %377 = vadd.xlane.f32.xlu2 %v376_v24 }
  0xe9   : > { %374 = vadd.xlane.f32.xlu1 %v373_v47 }
  0xf0   : > { %389 = vadd.xlane.f32.xlu0 %v388_v52  ;;  %386 = vadd.xlane.f32.xlu2 %v385_v32 }
  0xf1   : > { %383 = vadd.xlane.f32.xlu1 %v382_v54 }
  0xf8   : > { %398 = vadd.xlane.f32.xlu0 %v397_v57  ;;  %395 = vadd.xlane.f32.xlu2 %v394_v58 }
  0xf9   : > { %392 = vadd.xlane.f32.xlu1 %v391_v43 }
 0x101   : > { %401 = vadd.xlane.f32.xlu1 %v400_v60 }
 0x14b   : > { %v360_v61 = vpop.xlane.xlu2 %359  ;;  %v363_v10 = vpop.xlane.xlu0 %362 }
 0x14c   : > { %v840_v15 = vmul.f32 -1.442695, %v360_v61  ;;  %v357_v16 = vpop.xlane.xlu1 %356  ;;  %v841_v62 = vmul.f32 -1.442695, %v363_v10 }
 0x14d   : > { %v839_v55 = vmul.f32 -1.442695, %v357_v16 }
 0x14e   : > { %915 = vpow2.f32 %v840_v15 }
 0x14f   : > { %917 = vpow2.f32 %v839_v55 }
 0x150   : > { %919 = vpow2.f32 %v841_v62 }
 0x153   : > { %v369_v63 = vpop.xlane.xlu2 %368  ;;  %v372_v17 = vpop.xlane.xlu0 %371 }
 0x154   : > { %v916_v18 = vpop.eup %915  ;;  %v843_v19 = vmul.f32 -1.442695, %v369_v63  ;;  %v366_v20 = vpop.xlane.xlu1 %365  ;;  %v844_v28 = vmul.f32 -1.442695, %v372_v17 }
 0x155   : > { %v918_v21 = vpop.eup %917  ;;  %v452_v23 = vadd.f32 1.0, %v916_v18  ;;  %v842_v25 = vmul.f32 -1.442695, %v366_v20 }
 0x156   : > { %v920_v26 = vpop.eup %919  ;;  %v1315_v27 = vadd.f32 1.0, %v918_v21  ;;  %921 = vpow2.f32 %v843_v19 }
 0x157   : > { %923 = vrcp.f32 %v452_v23  ;;  %v1318_v29 = vadd.f32 1.0, %v920_v26  ;;  %v491_v30 = vand.u32 2147483647, %v452_v23  ;;  %v493_v31 = vand.u32 2147483648, %v452_v23 }
 0x158   : > { %925 = vrcp.f32 %v1315_v27  ;;  %v476_v35 = vand.u32 2147483647, %v1315_v27  ;;  %v478_v36 = vand.u32 2147483648, %v1315_v27  ;;  %vm487_vm1 = vweird.f32 %v452_v23 }
 0x159   : > { %927 = vpow2.f32 %v842_v25  ;;  %vm1325_vm2 = vcmp.eq.f32.partialorder %v491_v30, 8.507059e+37  ;;  %v494_v46 = vor.u32 1.1754944e-38, %v493_v31  ;;  %vm472_vm3 = vweird.f32 %v1315_v27 }
 0x15a   : > { %929 = vpow2.f32 %v844_v28  ;;  %vm1331_vm4 = vcmp.eq.f32.partialorder %v476_v35, 8.507059e+37  ;;  %v479_v49 = vor.u32 1.1754944e-38, %v478_v36  ;;  %v506_v50 = vand.u32 2147483647, %v1318_v29 }
 0x15b   : > { %931 = vrcp.f32 %v1318_v29  ;;  %v378_v37 = vpop.xlane.xlu2 %377  ;;  %v381_v51 = vpop.xlane.xlu0 %380  ;;  %vm502_vm5 = vweird.f32 %v1318_v29  ;;  %v508_v56 = vand.u32 2147483648, %v1318_v29 }
 0x15c   : > { %v922_v38 = vpop.eup %921  ;;  %v846_v39 = vmul.f32 -1.442695, %v378_v37  ;;  %v375_v22 = vpop.xlane.xlu1 %374  ;;  %v1344_v59 = vmul.f32 -1.442695, %v381_v51  ;;  %vm1348_vm8 = vcmp.eq.f32.partialorder %v506_v50, 8.507059e+37 }
 0x15d   : > { %v924_v40 = vpop.eup %923  ;;  %v1323_v41 = vadd.f32 1.0, %v922_v38  ;;  %v845_v54 = vmul.f32 -1.442695, %v375_v22  ;;  %v509_v63 = vor.u32 1.1754944e-38, %v508_v56 }
 0x15e   : > { %v926_v42 = vpop.eup %925  ;;  %v483_v44 = vmul.f32 %v924_v40, %v452_v23  ;;  %vm488_vm6 = vweird.f32 %v924_v40 }
 0x15f   : > { %v928_v24 = vpop.eup %927  ;;  %v468_v47 = vmul.f32 %v926_v42, %v1315_v27  ;;  %933 = vrcp.f32 %v1323_v41  ;;  %vm473_vm7 = vweird.f32 %v926_v42  ;;  %v536_v61 = vand.u32 2147483647, %v1323_v41  ;;  %vm489_vm9 = vmor %vm487_vm1, %vm488_vm6 }
 0x160   : > { %v930_v52 = vpop.eup %929  ;;  %v484_v32 = vsub.f32 1.0, %v483_v44  ;;  %v1337_v53 = vadd.f32 1.0, %v928_v24  ;;  %935 = vpow2.f32 %v846_v39  ;;  %v538_v17 = vand.u32 2147483648, %v1323_v41  ;;  %vm474_vm10 = vmor %vm472_vm3, %vm473_vm7 }
 0x161   : > { %v932_v34 = vpop.eup %931  ;;  %v469_v33 = vsub.f32 1.0, %v468_v47  ;;  %v1341_v57 = vadd.f32 1.0, %v930_v52  ;;  %vm532_vm12 = vweird.f32 %v1323_v41  ;;  %vm1362_vm13 = vcmp.eq.f32.partialorder %v536_v61, 8.507059e+37 }
 0x162   : > { %v485_v58 = vmul.f32 %v924_v40, %v484_v32  ;;  %v498_v43 = vmul.f32 %v932_v34, %v1318_v29  ;;  %937 = vrcp.f32 %v1337_v53  ;;  %vm503_vm11 = vweird.f32 %v932_v34 }
 0x163   : > { %v470_v60 = vmul.f32 %v926_v42, %v469_v33  ;;  %939 = vpow2.f32 %v845_v54  ;;  %vm504_vm14 = vmor %vm502_vm5, %vm503_vm11  ;;  %v539_v38 = vor.u32 1.1754944e-38, %v538_v17  ;;  %vm517_vm15 = vweird.f32 %v1337_v53  ;;  %v390_v50 = vpop.xlane.xlu0 %389 }
 0x164   : > { %v486_v10 = vadd.f32 %v924_v40, %v485_v58  ;;  %v499_v15 = vsub.f32 1.0, %v498_v43  ;;  %941 = vrcp.f32 %v1341_v57  ;;  %v1369_v35 = vpop.xlane.xlu1 %383  ;;  %v521_v45 = vand.u32 2147483647, %v1337_v53 }
 0x165   : > { %v934_v62 = vpop.eup %933  ;;  %v471_v55 = vadd.f32 %v926_v42, %v470_v60  ;;  %v551_v51 = vand.u32 2147483647, %v1341_v57  ;;  %v553_v52 = vand.u32 2147483648, %v1341_v57 }
 0x166   : > { %v936_v18 = vpop.eup %935  ;;  %v490_v19 = vsel %vm489_vm9, %v924_v40, %v486_v10  ;;  %v500_v20 = vmul.f32 %v932_v34, %v499_v15  ;;  %v528_v21 = vmul.f32 %v934_v62, %v1323_v41  ;;  %v387_v40 = vpop.xlane.xlu2 %386  ;;  %vm533_vm0 = vweird.f32 %v934_v62 }
 0x167   : > { %v495_v23 = vsel %vm1325_vm2, %v494_v46, %v490_v19  ;;  %v475_v25 = vsel %vm474_vm10, %v926_v42, %v471_v55  ;;  %v1375_v39 = vadd.f32 1.0, %v936_v18  ;;  %v523_v46 = vand.u32 2147483648, %v1337_v53  ;;  %vm534_vm1 = vmor %vm532_vm12, %vm533_vm0 }
 0x168   : > { %v708_v28 = vmul.f32 %v495_v23, %v1220_v5  ;;  %v480_v27 = vsel %vm1331_vm4, %v479_v49, %v475_v25  ;;  %v501_v30 = vadd.f32 %v932_v34, %v500_v20  ;;  %v529_v31 = vsub.f32 1.0, %v528_v21  ;;  %v938_v36 = vpop.eup %937 }
 0x169   : > { %v707_v37 = vmul.f32 %v480_v27, %v1208_v2  ;;  %v940_v5 = vpop.eup %939  ;;  %v513_v2 = vmul.f32 %v938_v36, %v1337_v53  ;;  %943 = vrcp.f32 %v1375_v39  ;;  %vm518_vm2 = vweird.f32 %v938_v36 }
 0x16a   : > { %724 = vst [vmem:[%s1379_s5 + $0x8] sm:$0xff] %v708_v28  ;;  %v505_v22 = vsel %vm504_vm14, %v932_v34, %v501_v30  ;;  %v530_v42 = vmul.f32 %v934_v62, %v529_v31  ;;  %v942_v29 = vpop.eup %941  ;;  %v1395_v32 = vadd.f32 1.0, %v940_v5  ;;  %945 = vpow2.f32 %v1344_v59  ;;  %vm519_vm6 = vmor %vm517_vm15, %vm518_vm2 }
 0x16b   : > { %723 = vst [vmem:[%s1379_s5] sm:$0xff] %v707_v37  ;;  %v510_v44 = vsel %vm1348_vm8, %v509_v63, %v505_v22  ;;  %v514_v48 = vsub.f32 1.0, %v513_v2  ;;  %v543_v49 = vmul.f32 %v942_v29, %v1341_v57  ;;  %vm1401_vm3 = vcmp.eq.f32.partialorder %v521_v45, 8.507059e+37  ;;  %v399_v37 = vpop.xlane.xlu0 %398 }
 0x16c   : > { %v709_v24 = vmul.f32 %v510_v44, %v1229_v7  ;;  %v531_v47 = vadd.f32 %v934_v62, %v530_v42  ;;  %vm547_vm4 = vweird.f32 %v1341_v57  ;;  %947 = vrcp.f32 %v1395_v32  ;;  %v393_v55 = vpop.xlane.xlu1 %392 }
 0x16d   : > { %v515_v34 = vmul.f32 %v938_v36, %v514_v48  ;;  %v544_v33 = vsub.f32 1.0, %v543_v49  ;;  %vm548_vm5 = vweird.f32 %v942_v29  ;;  %v524_v59 = vor.u32 1.1754944e-38, %v523_v46 }
 0x16e   : > { %725 = vst [vmem:[%s1379_s5 + $0x10] sm:$0xff] %v709_v24  ;;  %v535_v54 = vsel %vm534_vm1, %v934_v62, %v531_v47  ;;  %vm1411_vm7 = vcmp.eq.f32.partialorder %v551_v51, 8.507059e+37  ;;  %v554_v10 = vor.u32 1.1754944e-38, %v553_v52  ;;  %v849_v15 = vmul.f32 -1.442695, %v387_v40  ;;  %vm549_vm9 = vmor %vm547_vm4, %vm548_vm5  ;;  %v396_v18 = vpop.xlane.xlu2 %395 }
 0x16f   : > { %v540_v7 = vsel %vm1362_vm13, %v539_v38, %v535_v54  ;;  %v516_v58 = vadd.f32 %v938_v36, %v515_v34  ;;  %v545_v43 = vmul.f32 %v942_v29, %v544_v33  ;;  %v944_v60 = vpop.eup %943  ;;  %vm577_vm8 = vweird.f32 %v1375_v39 }
 0x170   : > { %v711_v56 = vmul.f32 %v540_v7, %v1205_v1  ;;  %v573_v1 = vmul.f32 %v944_v60, %v1375_v39  ;;  %v581_v53 = vand.u32 2147483647, %v1375_v39  ;;  %v583_v17 = vand.u32 2147483648, %v1375_v39  ;;  %v946_v19 = vpop.eup %945 }
 0x171   : > { %v520_v16 = vsel %vm519_vm6, %v938_v36, %v516_v58  ;;  %v546_v62 = vadd.f32 %v942_v29, %v545_v43  ;;  %949 = vpow2.f32 %v849_v15  ;;  %v848_v25 = vmul.f32 -1.442695, %v1369_v35 }
 0x172   : > { %727 = vst [vmem:[%s1379_s5 + $0x20] sm:$0xff] %v711_v56  ;;  %v525_v63 = vsel %vm1401_vm3, %v524_v59, %v520_v16  ;;  %v574_v23 = vsub.f32 1.0, %v573_v1  ;;  %v948_v26 = vpop.eup %947  ;;  %vm578_vm10 = vweird.f32 %v944_v60  ;;  %v1428_v28 = vadd.f32 1.0, %v946_v19 }
 0x173   : > { %v710_v20 = vmul.f32 %v525_v63, %v1253_v14  ;;  %v550_v21 = vsel %vm549_vm9, %v942_v29, %v546_v62  ;;  %v850_v27 = vmul.f32 -1.442695, %v390_v50  ;;  %v558_v36 = vmul.f32 %v948_v26, %v1395_v32  ;;  %vm579_vm12 = vmor %vm577_vm8, %vm578_vm10 }
 0x174   : > { %v555_v57 = vsel %vm1411_vm7, %v554_v10, %v550_v21  ;;  %v575_v31 = vmul.f32 %v944_v60, %v574_v23  ;;  %v852_v14 = vmul.f32 -1.442695, %v396_v18  ;;  %vm1433_vm11 = vcmp.eq.f32.partialorder %v581_v53, 8.507059e+37  ;;  %v402_v39 = vpop.xlane.xlu1 %401 }
 0x175   : > { %726 = vst [vmem:[%s1379_s5 + $0x18] sm:$0xff] %v710_v20  ;;  %v712_v30 = vmul.f32 %v555_v57, %v1217_v4  ;;  %v584_v35 = vor.u32 1.1754944e-38, %v583_v17  ;;  %v566_v40 = vand.u32 2147483647, %v1395_v32  ;;  %951 = vrcp.f32 %v1428_v28 }
 0x176   : > { %v576_v5 = vadd.f32 %v944_v60, %v575_v31  ;;  %v559_v22 = vsub.f32 1.0, %v558_v36  ;;  %953 = vpow2.f32 %v848_v25  ;;  %v851_v42 = vmul.f32 -1.442695, %v393_v55 }
 0x177   : > { %728 = vst [vmem:[%s1379_s5 + $0x28] sm:$0xff] %v712_v30  ;;  %v950_v4 = vpop.eup %949  ;;  %vm563_vm13 = vweird.f32 %v948_v26  ;;  %v568_v2 = vand.u32 2147483648, %v1395_v32  ;;  %955 = vpow2.f32 %v850_v27  ;;  %v853_v29 = vmul.f32 -1.442695, %v399_v37 }
 0x178   : > { %v580_v44 = vsel %vm579_vm12, %v944_v60, %v576_v5  ;;  %v560_v45 = vmul.f32 %v948_v26, %v559_v22  ;;  %v1444_v46 = vadd.f32 1.0, %v950_v4  ;;  %957 = vpow2.f32 %v852_v14 }
 0x179   : > { %v585_v24 = vsel %vm1433_vm11, %v584_v35, %v580_v44  ;;  %959 = vpow2.f32 %v851_v42  ;;  %vm562_vm14 = vweird.f32 %v1395_v32  ;;  %vm567_vm0 = vcmp.eq.f32.partialorder %v566_v40, 8.507059e+37 }
 0x17a   : > { %v714_v47 = vmul.f32 %v585_v24, %v1247_v12  ;;  %v561_v48 = vadd.f32 %v948_v26, %v560_v45  ;;  %961 = vrcp.f32 %v1444_v46  ;;  %vm564_vm15 = vmor %vm562_vm14, %vm563_vm13  ;;  %v569_v50 = vor.u32 1.1754944e-38, %v568_v2 }
 0x17b   : > { %v952_v49 = vpop.eup %951  ;;  %v596_v34 = vand.u32 2147483647, %v1428_v28  ;;  %963 = vpow2.f32 %v853_v29  ;;  %v598_v32 = vand.u32 2147483648, %v1428_v28  ;;  %v854_v41 = vmul.f32 -1.442695, %v402_v39 }
 0x17c   : > { %v954_v51 = vpop.eup %953  ;;  %730 = vst [vmem:[%s1379_s5 + $0x38] sm:$0xff] %v714_v47  ;;  %v565_v52 = vsel %vm564_vm15, %v948_v26, %v561_v48  ;;  %v588_v54 = vmul.f32 %v952_v49, %v1428_v28  ;;  %v626_v61 = vand.u32 2147483647, %v1444_v46  ;;  %vm592_vm1 = vweird.f32 %v1428_v28 }
 0x17d   : > { %v956_v12 = vpop.eup %955  ;;  %v570_v33 = vsel %vm567_vm0, %v569_v50, %v565_v52  ;;  %v1456_v7 = vadd.f32 1.0, %v954_v51  ;;  %vm593_vm2 = vweird.f32 %v952_v49  ;;  %vm1466_vm3 = vcmp.eq.f32.partialorder %v596_v34, 8.507059e+37 }
 0x17e   : > { %v958_v56 = vpop.eup %957  ;;  %v713_v58 = vmul.f32 %v570_v33, %v1242_v11  ;;  %v589_v43 = vsub.f32 1.0, %v588_v54  ;;  %v1459_v60 = vadd.f32 1.0, %v956_v12  ;;  %v599_v11 = vor.u32 1.1754944e-38, %v598_v32  ;;  %vm594_vm5 = vmor %vm592_vm1, %vm593_vm2 }
 0x17f   : > { %v960_v59 = vpop.eup %959  ;;  %965 = vrcp.f32 %v1456_v7  ;;  %vm622_vm4 = vweird.f32 %v1444_v46  ;;  %v628_v63 = vand.u32 2147483648, %v1444_v46  ;;  %v1473_v53 = vadd.f32 1.0, %v958_v56 }
 0x180   : > { %v962_v10 = vpop.eup %961  ;;  %729 = vst [vmem:[%s1379_s5 + $0x30] sm:$0xff] %v713_v58  ;;  %v590_v15 = vmul.f32 %v952_v49, %v589_v43  ;;  %967 = vrcp.f32 %v1459_v60  ;;  %vm1475_vm6 = vcmp.eq.f32.partialorder %v626_v61, 8.507059e+37  ;;  %v611_v19 = vand.u32 2147483647, %v1456_v7 }
 0x181   : > { %v618_v62 = vmul.f32 %v962_v10, %v1444_v46  ;;  %969 = vpow2.f32 %v854_v41  ;;  %v964_v1 = vpop.eup %963  ;;  %v1480_v20 = vadd.f32 1.0, %v960_v59  ;;  %v613_v23 = vand.u32 2147483648, %v1456_v7 }
 0x182   : > { %v591_v55 = vadd.f32 %v952_v49, %v590_v15  ;;  %v641_v25 = vand.u32 2147483647, %v1459_v60  ;;  %971 = vrcp.f32 %v1473_v53  ;;  %vm623_vm7 = vweird.f32 %v962_v10 }
 0x183   : > { %v619_v17 = vsub.f32 1.0, %v618_v62  ;;  %v1487_v27 = vadd.f32 1.0, %v964_v1  ;;  %v629_v36 = vor.u32 1.1754944e-38, %v628_v63  ;;  %973 = vrcp.f32 %v1480_v20  ;;  %vm624_vm10 = vmor %vm622_vm4, %vm623_vm7 }
 0x184   : > { %v595_v21 = vsel %vm594_vm5, %v952_v49, %v591_v55  ;;  %vm607_vm8 = vweird.f32 %v1456_v7  ;;  %vm637_vm9 = vweird.f32 %v1459_v60  ;;  %vm1498_vm11 = vcmp.eq.f32.partialorder %v611_v19, 8.507059e+37 }
 0x185   : > { %v966_v26 = vpop.eup %965  ;;  %v600_v57 = vsel %vm1466_vm3, %v599_v11, %v595_v21  ;;  %v620_v28 = vmul.f32 %v962_v10, %v619_v17  ;;  %v614_v5 = vor.u32 1.1754944e-38, %v613_v23  ;;  %v643_v22 = vand.u32 2147483648, %v1459_v60 }
 0x186   : > { %v968_v30 = vpop.eup %967  ;;  %v715_v31 = vmul.f32 %v600_v57, %v1202_v0  ;;  %v603_v14 = vmul.f32 %v966_v26, %v1456_v7  ;;  %vm1503_vm12 = vcmp.eq.f32.partialorder %v641_v25, 8.507059e+37  ;;  %975 = vrcp.f32 %v1487_v27  ;;  %v980_v0 = vld [vmem:[%s1195_s6 + $0x78] sm:$0xff] }
 0x187   : > { %v970_v37 = vpop.eup %969  ;;  %v621_v38 = vadd.f32 %v962_v10, %v620_v28  ;;  %v633_v35 = vmul.f32 %v968_v30, %v1459_v60  ;;  %vm608_vm13 = vweird.f32 %v966_v26  ;;  %vm638_vm14 = vweird.f32 %v968_v30 }
 0x188   : > { %731 = vst [vmem:[%s1379_s5 + $0x40] sm:$0xff] %v715_v31  ;;  %v604_v40 = vsub.f32 1.0, %v603_v14  ;;  %v972_v29 = vpop.eup %971  ;;  %v1510_v46 = vadd.f32 1.0, %v970_v37  ;;  %v644_v50 = vor.u32 1.1754944e-38, %v643_v22  ;;  %vm667_vm15 = vweird.f32 %v1473_v53  ;;  %vm609_vm0 = vmor %vm607_vm8, %vm608_vm13 }
 0x189   : > { %v625_v42 = vsel %vm624_vm10, %v962_v10, %v621_v38  ;;  %v634_v4 = vsub.f32 1.0, %v633_v35  ;;  %v663_v48 = vmul.f32 %v972_v29, %v1473_v53  ;;  %v974_v39 = vpop.eup %973  ;;  %v671_v51 = vand.u32 2147483647, %v1473_v53  ;;  %vm639_vm1 = vmor %vm637_vm9, %vm638_vm14 }
 0x18a   : > { %v630_v44 = vsel %vm1475_vm6, %v629_v36, %v625_v42  ;;  %v605_v45 = vmul.f32 %v966_v26, %v604_v40  ;;  %v673_v34 = vand.u32 2147483648, %v1473_v53  ;;  %vm668_vm2 = vweird.f32 %v972_v29 }
 0x18b   : > { %v717_v24 = vmul.f32 %v630_v44, %v1238_v9  ;;  %v635_v47 = vmul.f32 %v968_v30, %v634_v4  ;;  %v664_v54 = vsub.f32 1.0, %v663_v48  ;;  %v648_v9 = vmul.f32 %v974_v39, %v1480_v20  ;;  %vm669_vm4 = vmor %vm667_vm15, %vm668_vm2 }
 0x18c   : > { %v606_v49 = vadd.f32 %v966_v26, %v605_v45  ;;  %v658_v33 = vand.u32 2147483648, %v1480_v20  ;;  %977 = vrcp.f32 %v1510_v46  ;;  %v976_v32 = vpop.eup %975  ;;  %v656_v59 = vand.u32 2147483647, %v1480_v20 }
 0x18d   : > { %733 = vst [vmem:[%s1379_s5 + $0x50] sm:$0xff] %v717_v24  ;;  %v636_v52 = vadd.f32 %v968_v30, %v635_v47  ;;  %v665_v56 = vmul.f32 %v972_v29, %v664_v54  ;;  %v649_v58 = vsub.f32 1.0, %v648_v9  ;;  %v678_v61 = vmul.f32 %v976_v32, %v1487_v27 }
 0x18e   : > { %v610_v12 = vsel %vm609_vm0, %v966_v26, %v606_v49  ;;  %vm653_vm3 = vweird.f32 %v974_v39  ;;  %vm672_vm5 = vcmp.eq.f32.partialorder %v671_v51, 8.507059e+37  ;;  %v674_v11 = vor.u32 1.1754944e-38, %v673_v34 }
 0x18f   : > { %v615_v7 = vsel %vm1498_vm11, %v614_v5, %v610_v12  ;;  %v640_v41 = vsel %vm639_vm1, %v968_v30, %v636_v52  ;;  %v666_v15 = vadd.f32 %v972_v29, %v665_v56  ;;  %v650_v16 = vmul.f32 %v974_v39, %v649_v58 }
 0x190   : > { %v716_v43 = vmul.f32 %v615_v7, %v1214_v3  ;;  %v645_v60 = vsel %vm1503_vm12, %v644_v50, %v640_v41  ;;  %vm652_vm6 = vweird.f32 %v1480_v20  ;;  %v679_v3 = vsub.f32 1.0, %v678_v61 }
 0x191   : > { %v718_v10 = vmul.f32 %v645_v60, %v1250_v13  ;;  %v670_v62 = vsel %vm669_vm4, %v972_v29, %v666_v15  ;;  %v651_v1 = vadd.f32 %v974_v39, %v650_v16  ;;  %v659_v55 = vor.u32 1.1754944e-38, %v658_v33  ;;  %vm654_vm7 = vmor %vm652_vm6, %vm653_vm3 }
 0x192   : > { %732 = vst [vmem:[%s1379_s5 + $0x48] sm:$0xff] %v716_v43  ;;  %v688_v13 = vand.u32 2147483648, %v1487_v27  ;;  %v978_v63 = vpop.eup %977  ;;  %v675_v17 = vsel %vm672_vm5, %v674_v11, %v670_v62  ;;  %v680_v18 = vmul.f32 %v976_v32, %v679_v3  ;;  %vm683_vm8 = vweird.f32 %v976_v32 }
 0x193   : > { %734 = vst [vmem:[%s1379_s5 + $0x58] sm:$0xff] %v718_v10  ;;  %v686_v53 = vand.u32 2147483647, %v1487_v27  ;;  %v720_v19 = vmul.f32 %v675_v17, %v1226_v6  ;;  %v655_v21 = vsel %vm654_vm7, %v974_v39, %v651_v1  ;;  %vm657_vm9 = vcmp.eq.f32.partialorder %v656_v59, 8.507059e+37 }
 0x194   : > { %v693_v20 = vmul.f32 %v978_v63, %v1510_v46  ;;  %v660_v23 = vsel %vm657_vm9, %v659_v55, %v655_v21  ;;  %v681_v25 = vadd.f32 %v976_v32, %v680_v18  ;;  %vm682_vm10 = vweird.f32 %v1487_v27  ;;  %v979_v27 = vld [vmem:[%s1195_s6 + $0x70] sm:$0xff] }
 0x195   : > { %736 = vst [vmem:[%s1379_s5 + $0x68] sm:$0xff] %v720_v19  ;;  %v719_v26 = vmul.f32 %v660_v23, %v1232_v8  ;;  %vm684_vm11 = vmor %vm682_vm10, %vm683_vm8  ;;  %v689_v57 = vor.u32 1.1754944e-38, %v688_v13  ;;  %vm687_vm12 = vcmp.eq.f32.partialorder %v686_v53, 8.507059e+37  ;;  %v703_v30 = vand.u32 2147483648, %v1510_v46 }
 0x196   : > { %v694_v28 = vsub.f32 1.0, %v693_v20  ;;  %v685_v6 = vsel %vm684_vm11, %v976_v32, %v681_v25  ;;  %vm698_vm13 = vweird.f32 %v978_v63  ;;  %v701_v8 = vand.u32 2147483647, %v1510_v46 }
 0x197   : > { %735 = vst [vmem:[%s1379_s5 + $0x60] sm:$0xff] %v719_v26  ;;  %v690_v31 = vsel %vm687_vm12, %v689_v57, %v685_v6  ;;  %vm697_vm14 = vweird.f32 %v1510_v46  ;;  %v704_v38 = vor.u32 1.1754944e-38, %v703_v30 }
 0x198   : > { %v695_v36 = vmul.f32 %v978_v63, %v694_v28  ;;  %v721_v14 = vmul.f32 %v979_v27, %v690_v31  ;;  %vm699_vm15 = vmor %vm697_vm14, %vm698_vm13  ;;  %vm702_vm0 = vcmp.eq.f32.partialorder %v701_v8, 8.507059e+37 }
 0x19a   : > { %v696_v37 = vadd.f32 %v978_v63, %v695_v36  ;;  %737 = vst [vmem:[%s1379_s5 + $0x70] sm:$0xff] %v721_v14 }
 0x19c   : > { %v700_v35 = vsel %vm699_vm15, %v978_v63, %v696_v37 }
 0x19d   : > { %v705_v40 = vsel %vm702_vm0, %v704_v38, %v700_v35 }
 0x19e   : > { %v722_v5 = vmul.f32 %v980_v0, %v705_v40 }
 0x1a0   : > { %738 = vst [vmem:[%s1379_s5 + $0x78] sm:$0xff] %v722_v5 }
 0x1a1   : > { %1038 = shalt.err (!%p1035_p4)
}
 0x1a2   : > { %s1081_s29 = smov 128   ;;  %s1082_s6 = smov 8  }
 0x1a3   : > { %867 = dma.vmem_to_hbm [thread:$0]  (%p1153_p11), %s754_s9, 2048, %s756_s10, %s740_s11, %s1081_s29, %s1081_s29, %s1082_s6  }
 0x1a4 PF: > { %s770_s4 = sand.u32 1, %s1065_s12   ;;  %p1619_p7 = scmp.ge.s32.totalorder %s1077_s15, 2 }
 0x1a5   : > { %s771_s23 = scalar_lea.sflag [#allocation4], %s770_s4 }
 0x1a6   : > { %p874_p5 = pnand %p1619_p7, %p1157_p12 }
 0x1a8   : > { %p875_p8 = pneg %p874_p5 }
 0x1aa   : > { %1060 = dma.done.wait (%p875_p8), %s771_s23, 2048  }
 0x1ab   : > { %1062 = vsyncadd (%p875_p8), %s771_s23, 4294965248  ;;  %p16_p10 = scmp.ge.s32.totalorder %s1128_s18, 4   ;;  %s1620_s12 = smov %s1069_s13 }
 0x1ac   : > { %s1621_s13 = smov %s1073_s14  ;;  %s1622_s14 = smov %s1140_s21 }
 0x1ad   : > { %s1623_s15 = smov %s1128_s18  ;;  %18 = sbr.rel (!%p16_p10) target bundleno = 5 (0x5), region = 77 }
 0x1b2   :  { %777 = vsyncpa [#allocation3], 1 }
 0x1b3   :  { %779 = vsyncpa [#allocation3 + $0x1], 1 }
 0x1b4   :  { %780 = vsyncpa [#allocation4], 1 }
 0x1b5   :  { %782 = vsyncpa [#allocation4 + $0x1], 1 }

</bundles_post_ra>
